<compile_context>
chip_gen: v6e
topology: v6e:2x2x1
jax: 0.10.0
libtpu: 0.0.40
codegen_flags: <defaults>
</compile_context>

<pallas_src>
import functools

import jax
import jax.numpy as jnp
from jax.experimental import pallas as pl
from jax.experimental.pallas import tpu as pltpu

SUBLANE_F32 = 8   # f32 sublane granularity for the streamed batch tiles
EPS = 0.001


def _round_up(n, m):
    return ((n + m - 1) // m) * m


# ----------------------------------------------------------------------------
# Kernel: full 4-layer MLP for one [tile_b, state_dim] batch tile.
# ----------------------------------------------------------------------------
def actor_kernel(x_ref,
                 w1_ref, b1_ref,
                 w2_ref, b2_ref,
                 w3_ref, b3_ref,
                 w4_ref, b4_ref,
                 out_ref, *, action_lim):
    # x streams at its natural width (f32) and is cast to bf16 in-register.
    x = x_ref[...].astype(jnp.bfloat16)

    # bf16 x bf16 MXU matmuls with f32 accumulation; elementwise work in f32.
    # ReLU is fused with the bf16 downcast so the value living between layers
    # (which may spill to VMEM at large tile_b) is bf16, not f32.
    h = jnp.dot(x, w1_ref[...], preferred_element_type=jnp.float32) + b1_ref[...]
    h = jnp.maximum(h, 0.0).astype(jnp.bfloat16)

    h = jnp.dot(h, w2_ref[...], preferred_element_type=jnp.float32) + b2_ref[...]
    h = jnp.maximum(h, 0.0).astype(jnp.bfloat16)

    h = jnp.dot(h, w3_ref[...], preferred_element_type=jnp.float32) + b3_ref[...]
    h = jnp.maximum(h, 0.0).astype(jnp.bfloat16)

    y = jnp.dot(h, w4_ref[...], preferred_element_type=jnp.float32) + b4_ref[...]
    out_ref[...] = (jnp.tanh(y) * action_lim).astype(out_ref.dtype)


# ----------------------------------------------------------------------------
# Parameter packing (done once, outside the hot path)
# ----------------------------------------------------------------------------
def pack_params(params):
    """Pre-transpose weights to [in, out] (plain x @ W on the MXU, no in-kernel
    transposes), cast weights to bf16, keep biases f32 as [1, out]. No lane
    padding: each weight block is the full (small) array, which is a legal
    block shape, and padding would only add dead HBM/VMEM bytes."""
    packed = {}
    for i in (1, 2, 3, 4):
        w = jnp.asarray(params[f"w{i}"], jnp.float32)   # PyTorch layout: [out, in]
        b = jnp.asarray(params[f"b{i}"], jnp.float32)   # [out]
        packed[f"w{i}"] = w.T.astype(jnp.bfloat16)      # [in, out] bf16
        packed[f"b{i}"] = b.reshape(1, -1)              # [1, out]  f32
    return packed


# ----------------------------------------------------------------------------
# Wrapper
# ----------------------------------------------------------------------------
def actor_forward(x, packed, action_lim, tile_b=1024):
    """x: [batch, state_dim] f32 (un-padded). Returns [batch, action_dim] f32.

    tile_b default (1024) targets v6e/v7x; on v5e (MXU-bound after the I/O
    fixes) sweep 256-512 instead.
    """
    batch, state_dim = x.shape
    hidden1 = packed["w1"].shape[1]
    hidden2 = packed["w2"].shape[1]
    hidden3 = packed["w3"].shape[1]
    action_dim = packed["w4"].shape[1]

    # Batch tiling: keep >=2 grid steps when the batch allows it so the v7x
    # megacore can split the (parallel) batch axis across both cores. Ragged
    # last block is handled by the pipeline (out-of-bounds output rows are
    # masked on writeback; batch rows are independent, so garbage input rows
    # in the last block cannot contaminate real rows).
    tile_b = max(SUBLANE_F32,
                 min(int(tile_b), _round_up(pl.cdiv(batch, 2), SUBLANE_F32)))
    grid_b = pl.cdiv(batch, tile_b)

    weight_args = (packed["w1"], packed["b1"],
                   packed["w2"], packed["b2"],
                   packed["w3"], packed["b3"],
                   packed["w4"], packed["b4"])

    def resident_spec(arr):
        # Constant block index -> stays resident in VMEM while x/out stream.
        # Buffered(1): no point double-buffering blocks that never change.
        return pl.BlockSpec(arr.shape, lambda i: (0, 0),
                            pipeline_mode=pl.Buffered(1))

    flops = 2 * batch * (state_dim * hidden1 + hidden1 * hidden2
                         + hidden2 * hidden3 + hidden3 * action_dim)
    param_bytes = sum(int(packed[f"w{i}"].size) * 2 + int(packed[f"b{i}"].size) * 4
                      for i in (1, 2, 3, 4))
    cost = pl.CostEstimate(
        flops=flops,
        transcendentals=batch * action_dim,
        bytes_accessed=batch * 4 * (state_dim + action_dim) + param_bytes)

    kernel = functools.partial(actor_kernel, action_lim=float(action_lim))

    return pl.pallas_call(
        kernel,
        out_shape=jax.ShapeDtypeStruct((batch, action_dim), jnp.float32),
        grid=(grid_b,),
        in_specs=[pl.BlockSpec((tile_b, state_dim), lambda i: (i, 0))]
                 + [resident_spec(a) for a in weight_args],
        out_specs=pl.BlockSpec((tile_b, action_dim), lambda i: (i, 0)),
        compiler_params=pltpu.CompilerParams(
            dimension_semantics=("parallel",)),
        cost_estimate=cost,
    )(x, *weight_args)


# ----------------------------------------------------------------------------
# Init + reference (f32), mirroring the PyTorch module
# ----------------------------------------------------------------------------
def init_params(key, state_dim, action_dim):
    """fc1..fc3 weights ~ fanin_init (normal, std = 1/sqrt(size[0])),
    fc4 weight ~ U(-EPS, EPS); biases ~ PyTorch Linear default U(+-1/sqrt(fan_in))."""
    dims = [(256, state_dim), (128, 256), (64, 128), (action_dim, 64)]
    params = {}
    keys = jax.random.split(key, 2 * len(dims))
    for i, (out_f, in_f) in enumerate(dims):
        kw, kb = keys[2 * i], keys[2 * i + 1]
        if i < 3:
            std = 1.0 / jnp.sqrt(jnp.float32(out_f))   # fanin_init uses size[0]
            w = std * jax.random.normal(kw, (out_f, in_f), jnp.float32)
        else:
            w = jax.random.uniform(kw, (out_f, in_f), jnp.float32, -EPS, EPS)
        bound = 1.0 / jnp.sqrt(jnp.float32(in_f))
        b = jax.random.uniform(kb, (out_f,), jnp.float32, -bound, bound)
        params[f"w{i + 1}"] = w
        params[f"b{i + 1}"] = b
    return params


def reference_forward(x, params, action_lim):
    y = x
    for i in (1, 2, 3):
        y = jnp.maximum(y @ params[f"w{i}"].T + params[f"b{i}"], 0.0)
    y = y @ params["w4"].T + params["b4"]
    return jnp.tanh(y) * action_lim


if __name__ == "__main__":
    state_dim, action_dim, action_lim = 8, 4, 2.0
    batch = 4

    key = jax.random.PRNGKey(0)
    k_params, k_x = jax.random.split(key)
    params = init_params(k_params, state_dim, action_dim)
    packed = pack_params(params)
    x = jax.random.normal(k_x, (batch, state_dim), jnp.float32)

    out = actor_forward(x, packed, action_lim)
    out = jax.block_until_ready(out)

    ref = reference_forward(x, params, action_lim)
    assert out.shape == (batch, action_dim)
    # bf16 matmul inputs with f32 accumulation -> small quantization error vs f32 ref.
    assert jnp.allclose(out, ref, atol=2e-2, rtol=2e-2), (
        float(jnp.max(jnp.abs(out - ref))))
    print("KERNEL_OK")
</pallas_src>

<mosaic_0001>
module attributes {stable_mosaic.version = 11 : i64} {
  func.func @actor_kernel(%arg0: i32, %arg1: memref<8x8xf32, #tpu.memory_space<vmem>>, %arg2: memref<8x256xbf16, #tpu.memory_space<vmem>>, %arg3: memref<1x256xf32, #tpu.memory_space<vmem>>, %arg4: memref<256x128xbf16, #tpu.memory_space<vmem>>, %arg5: memref<1x128xf32, #tpu.memory_space<vmem>>, %arg6: memref<128x64xbf16, #tpu.memory_space<vmem>>, %arg7: memref<1x64xf32, #tpu.memory_space<vmem>>, %arg8: memref<64x4xbf16, #tpu.memory_space<vmem>>, %arg9: memref<1x4xf32, #tpu.memory_space<vmem>>, %arg10: memref<8x4xf32, #tpu.memory_space<vmem>>) attributes {dimension_semantics = [#tpu.dimension_semantics<parallel>], iteration_bounds = array<i64: 1>, scalar_prefetch = 0 : i64, scratch_operands = 0 : i64, tpu.core_type = #tpu.core_type<tc>, window_params = [{transform_indices = @transform_0, window_bounds = array<i64: 8, 8>}, {pipeline_mode = #tpu.pipeline_mode<synchronous>, transform_indices = @transform_1, window_bounds = array<i64: 8, 256>}, {pipeline_mode = #tpu.pipeline_mode<synchronous>, transform_indices = @transform_2, window_bounds = array<i64: 1, 256>}, {pipeline_mode = #tpu.pipeline_mode<synchronous>, transform_indices = @transform_3, window_bounds = array<i64: 256, 128>}, {pipeline_mode = #tpu.pipeline_mode<synchronous>, transform_indices = @transform_4, window_bounds = array<i64: 1, 128>}, {pipeline_mode = #tpu.pipeline_mode<synchronous>, transform_indices = @transform_5, window_bounds = array<i64: 128, 64>}, {pipeline_mode = #tpu.pipeline_mode<synchronous>, transform_indices = @transform_6, window_bounds = array<i64: 1, 64>}, {pipeline_mode = #tpu.pipeline_mode<synchronous>, transform_indices = @transform_7, window_bounds = array<i64: 64, 4>}, {pipeline_mode = #tpu.pipeline_mode<synchronous>, transform_indices = @transform_8, window_bounds = array<i64: 1, 4>}, {transform_indices = @transform_9, window_bounds = array<i64: 8, 4>}]} {
    %c0 = arith.constant 0 : index
    %c0_0 = arith.constant 0 : index
    %0 = vector.load %arg1[%c0, %c0_0] : memref<8x8xf32, #tpu.memory_space<vmem>>, vector<8x8xf32>
    %1 = arith.truncf %0 : vector<8x8xf32> to vector<8x8xbf16>
    %c0_1 = arith.constant 0 : index
    %c0_2 = arith.constant 0 : index
    %2 = vector.load %arg2[%c0_1, %c0_2] : memref<8x256xbf16, #tpu.memory_space<vmem>>, vector<8x256xbf16>
    %cst = arith.constant dense<0.000000e+00> : vector<8x256xf32>
    %3 = tpu.matmul %1, %2, %cst {dimension_numbers = #tpu.dot_dimension_numbers<[1], [0], [0], [1], [0, 0, 1, 1], [], []>} : vector<8x8xbf16>, vector<8x256xbf16>, vector<8x256xf32> -> vector<8x256xf32>
    %c0_3 = arith.constant 0 : index
    %c0_4 = arith.constant 0 : index
    %4 = vector.load %arg3[%c0_3, %c0_4] : memref<1x256xf32, #tpu.memory_space<vmem>>, vector<1x256xf32>
    %5 = vector.broadcast %4 : vector<1x256xf32> to vector<8x256xf32>
    %6 = arith.addf %3, %5 : vector<8x256xf32>
    %cst_5 = arith.constant 0.000000e+00 : f32
    %7 = vector.broadcast %cst_5 : f32 to vector<8x256xf32>
    %8 = arith.maximumf %6, %7 : vector<8x256xf32>
    %9 = arith.truncf %8 : vector<8x256xf32> to vector<8x256xbf16>
    %c0_6 = arith.constant 0 : index
    %c0_7 = arith.constant 0 : index
    %10 = vector.load %arg4[%c0_6, %c0_7] : memref<256x128xbf16, #tpu.memory_space<vmem>>, vector<256x128xbf16>
    %cst_8 = arith.constant dense<0.000000e+00> : vector<8x128xf32>
    %11 = tpu.matmul %9, %10, %cst_8 {dimension_numbers = #tpu.dot_dimension_numbers<[1], [0], [0], [1], [0, 0, 1, 1], [], []>} : vector<8x256xbf16>, vector<256x128xbf16>, vector<8x128xf32> -> vector<8x128xf32>
    %c0_9 = arith.constant 0 : index
    %c0_10 = arith.constant 0 : index
    %12 = vector.load %arg5[%c0_9, %c0_10] : memref<1x128xf32, #tpu.memory_space<vmem>>, vector<1x128xf32>
    %13 = vector.broadcast %12 : vector<1x128xf32> to vector<8x128xf32>
    %14 = arith.addf %11, %13 : vector<8x128xf32>
    %cst_11 = arith.constant 0.000000e+00 : f32
    %15 = vector.broadcast %cst_11 : f32 to vector<8x128xf32>
    %16 = arith.maximumf %14, %15 : vector<8x128xf32>
    %17 = arith.truncf %16 : vector<8x128xf32> to vector<8x128xbf16>
    %c0_12 = arith.constant 0 : index
    %c0_13 = arith.constant 0 : index
    %18 = vector.load %arg6[%c0_12, %c0_13] : memref<128x64xbf16, #tpu.memory_space<vmem>>, vector<128x64xbf16>
    %cst_14 = arith.constant dense<0.000000e+00> : vector<8x64xf32>
    %19 = tpu.matmul %17, %18, %cst_14 {dimension_numbers = #tpu.dot_dimension_numbers<[1], [0], [0], [1], [0, 0, 1, 1], [], []>} : vector<8x128xbf16>, vector<128x64xbf16>, vector<8x64xf32> -> vector<8x64xf32>
    %c0_15 = arith.constant 0 : index
    %c0_16 = arith.constant 0 : index
    %20 = vector.load %arg7[%c0_15, %c0_16] : memref<1x64xf32, #tpu.memory_space<vmem>>, vector<1x64xf32>
    %21 = vector.broadcast %20 : vector<1x64xf32> to vector<8x64xf32>
    %22 = arith.addf %19, %21 : vector<8x64xf32>
    %cst_17 = arith.constant 0.000000e+00 : f32
    %23 = vector.broadcast %cst_17 : f32 to vector<8x64xf32>
    %24 = arith.maximumf %22, %23 : vector<8x64xf32>
    %25 = arith.truncf %24 : vector<8x64xf32> to vector<8x64xbf16>
    %c0_18 = arith.constant 0 : index
    %c0_19 = arith.constant 0 : index
    %26 = vector.load %arg8[%c0_18, %c0_19] : memref<64x4xbf16, #tpu.memory_space<vmem>>, vector<64x4xbf16>
    %cst_20 = arith.constant dense<0.000000e+00> : vector<8x4xf32>
    %27 = tpu.matmul %25, %26, %cst_20 {dimension_numbers = #tpu.dot_dimension_numbers<[1], [0], [0], [1], [0, 0, 1, 1], [], []>} : vector<8x64xbf16>, vector<64x4xbf16>, vector<8x4xf32> -> vector<8x4xf32>
    %c0_21 = arith.constant 0 : index
    %c0_22 = arith.constant 0 : index
    %28 = vector.load %arg9[%c0_21, %c0_22] : memref<1x4xf32, #tpu.memory_space<vmem>>, vector<1x4xf32>
    %29 = vector.broadcast %28 : vector<1x4xf32> to vector<8x4xf32>
    %30 = arith.addf %27, %29 : vector<8x4xf32>
    %31 = math.tanh %30 : vector<8x4xf32>
    %cst_23 = arith.constant 2.000000e+00 : f32
    %32 = vector.broadcast %cst_23 : f32 to vector<8x4xf32>
    %33 = arith.mulf %31, %32 : vector<8x4xf32>
    %c0_24 = arith.constant 0 : index
    %c0_25 = arith.constant 0 : index
    %34 = vector.load %arg10[%c0_24, %c0_25] : memref<8x4xf32, #tpu.memory_space<vmem>>, vector<8x4xf32>
    tpu.vector_store %arg10[%c0_24, %c0_25], %33 {strides = array<i32>} : memref<8x4xf32, #tpu.memory_space<vmem>>, vector<8x4xf32>,
    return
  }
  func.func @transform_0(%arg0: i32) -> (i32, i32) {
    %c0_i32 = arith.constant 0 : i32
    %c0_i32_0 = arith.constant 0 : i32
    return %arg0, %c0_i32 : i32, i32
  }
  func.func @transform_1(%arg0: i32) -> (i32, i32) {
    %c0_i32 = arith.constant 0 : i32
    %c0_i32_0 = arith.constant 0 : i32
    %c0_i32_1 = arith.constant 0 : i32
    return %c0_i32, %c0_i32_0 : i32, i32
  }
  func.func @transform_2(%arg0: i32) -> (i32, i32) {
    %c0_i32 = arith.constant 0 : i32
    %c0_i32_0 = arith.constant 0 : i32
    %c0_i32_1 = arith.constant 0 : i32
    return %c0_i32, %c0_i32_0 : i32, i32
  }
  func.func @transform_3(%arg0: i32) -> (i32, i32) {
    %c0_i32 = arith.constant 0 : i32
    %c0_i32_0 = arith.constant 0 : i32
    %c0_i32_1 = arith.constant 0 : i32
    return %c0_i32, %c0_i32_0 : i32, i32
  }
  func.func @transform_4(%arg0: i32) -> (i32, i32) {
    %c0_i32 = arith.constant 0 : i32
    %c0_i32_0 = arith.constant 0 : i32
    %c0_i32_1 = arith.constant 0 : i32
    return %c0_i32, %c0_i32_0 : i32, i32
  }
  func.func @transform_5(%arg0: i32) -> (i32, i32) {
    %c0_i32 = arith.constant 0 : i32
    %c0_i32_0 = arith.constant 0 : i32
    %c0_i32_1 = arith.constant 0 : i32
    return %c0_i32, %c0_i32_0 : i32, i32
  }
  func.func @transform_6(%arg0: i32) -> (i32, i32) {
    %c0_i32 = arith.constant 0 : i32
    %c0_i32_0 = arith.constant 0 : i32
    %c0_i32_1 = arith.constant 0 : i32
    return %c0_i32, %c0_i32_0 : i32, i32
  }
  func.func @transform_7(%arg0: i32) -> (i32, i32) {
    %c0_i32 = arith.constant 0 : i32
    %c0_i32_0 = arith.constant 0 : i32
    %c0_i32_1 = arith.constant 0 : i32
    return %c0_i32, %c0_i32_0 : i32, i32
  }
  func.func @transform_8(%arg0: i32) -> (i32, i32) {
    %c0_i32 = arith.constant 0 : i32
    %c0_i32_0 = arith.constant 0 : i32
    %c0_i32_1 = arith.constant 0 : i32
    return %c0_i32, %c0_i32_0 : i32, i32
  }
  func.func @transform_9(%arg0: i32) -> (i32, i32) {
    %c0_i32 = arith.constant 0 : i32
    %c0_i32_0 = arith.constant 0 : i32
    return %arg0, %c0_i32 : i32, i32
  }
}

</mosaic_0001>

<bundles_post_ra>
// kernel: tpu_custom_call.1
= control target key start
LH: loop header
LB: loop body
LE: loop exit
PB: predicated region body
PF: predicated region fallthrough
CT: control target
= control target key end

     0   :  { %14 = vsyncpa [#allocation3], 0  ;;  %s879_s0 = inlined_call_operand.vmem [shape: f32[4,8], index: 0, kind: input, shape index: {}]   ;;  %s880_s1 = inlined_call_operand.hbm [shape: bf16[8,256], index: 1, kind: input, shape index: {}]   ;;  %s881_s2 = inlined_call_operand.vmem [shape: f32[1,256], index: 2, kind: input, shape index: {}]   ;;  %s882_s3 = inlined_call_operand.vmem [shape: bf16[256,128], index: 3, kind: input, shape index: {}]   ;;  %s883_s4 = inlined_call_operand.vmem [shape: f32[1,128], index: 4, kind: input, shape index: {}]   ;;  %s884_s5 = inlined_call_operand.vmem [shape: bf16[128,64], index: 5, kind: input, shape index: {}]   ;;  %s885_s6 = inlined_call_operand.vmem [shape: f32[1,64], index: 6, kind: input, shape index: {}]   ;;  %s886_s7 = inlined_call_operand.vmem [shape: bf16[64,4], index: 7, kind: input, shape index: {}]   ;;  %s887_s8 = inlined_call_operand.vmem [shape: f32[1,4], index: 8, kind: input, shape index: {}]   ;;  %s888_s9 = inlined_call_operand.hbm [shape: f32[4,4], index: 9, kind: output, shape index: {}]  }
   0x1   :  { %15 = vsyncpa [#allocation4], 0  ;;  %s703_s30 = smov [#allocation2]  }
   0x2   :  { %s24_s10 = sshll.u32 %s703_s30, 4  ;;  %s25_s10 = int_to_ptr.vmem [resolvable:$true] %s24_s10 }
   0x3   :  { %s667_s11 = scalar_lea.vmem %s25_s10, 128  ;;  %p672_p1 = scmp.lt.s32.totalorder %s25_s10, %s25_s10 }
   0x4   :  { %p668_p0 = scmp.ne.s32.totalorder %s25_s10, %s667_s11  ;;  %p673_p2 = scmp.lt.s32.totalorder %s667_s11, %s667_s11 }
   0x6   :  { %p674_p3 = por %p673_p2, %p672_p1 }
   0x8   :  { %p675_p4 = pnand %p674_p3, %p668_p0 }
   0xa   :  { %678 = shalt.err (!%p675_p4)
}
   0xb   :  { %27 = dma.hbm_to_vmem [thread:$0]  %s880_s1, 128, %s25_s10, [#allocation3]  }
   0xc   :  { %699 = dma.done.wait [#allocation3], 128  }
   0xd   :  { %700 = vsyncadd [#allocation3], 4294967168  ;;  %v704_v0 = vmov 0   ;;  %v48_v1 = vld [vmem:[#allocation2] sm:$0xff]  ;;  %vm70_vm0 = vcmask 1043456   ;;  %v629_v5 = vld [vmem:[%s882_s3 + $0x78] sm:$0xff]   ;;  %v51_v29 = vlaneseq }
   0xe   :  { %109 = vmatprep.mubr.bf16.mxu0 %v704_v0  ;;  %v46_v2 = vld [vmem:[%s879_s0] sm:$0xff]  ;;  %v517_v3 = vcombine.high %v48_v1, %v48_v1  ;;  %v516_v4 = vcombine.low %v48_v1, %v48_v1  ;;  %v630_v6 = vld [vmem:[%s882_s3 + $0x38] sm:$0xff]   ;;  %552 = vmatprep.subr.bf16.mxu1 %v629_v5  ;;  %v631_v9 = vld [vmem:[%s882_s3 + $0x70] sm:$0xff]   ;;  %vm66_vm1 = vcmask 64512   ;;  %v705_v24 = vmov 0.0  }
   0xf   :  { %v47_v8 = vpack.c.bf16 %v46_v2, %v46_v2  ;;  %553 = vmatpush3.bf16.msra.mxu1 %v630_v6  ;;  %v632_v10 = vld [vmem:[%s882_s3 + $0x30] sm:$0xff]   ;;  %v633_v11 = vld [vmem:[%s882_s3 + $0x68] sm:$0xff]   ;;  %v635_v13 = vld [vmem:[%s882_s3 + $0x60] sm:$0xff]   ;;  %v52_v30 = vshrl.u32 %v51_v29, 7  ;;  %vm706_vm2 = vmmov 0   ;;  %vm451_vm3 = vcmask 523264  }
  0x10   :  { %518 = vmatprep.subr.msk.bf16.mxu0 %vm70_vm0, %v517_v3  ;;  %v72_v7 = vsel %vm70_vm0, %v516_v4, 0  ;;  %554 = vmatprep.subr.bf16.mxu1 %v631_v9  ;;  %v634_v12 = vld [vmem:[%s882_s3 + $0x28] sm:$0xff]   ;;  %v636_v14 = vld [vmem:[%s882_s3 + $0x20] sm:$0xff]   ;;  %v637_v15 = vld [vmem:[%s882_s3 + $0x58] sm:$0xff]   ;;  %vm497_vm4 = vcmask 31744  }
  0x11   :  { %92 = vmatpush1.bf16.msra.mxu0 %v72_v7  ;;  %v638_v16 = vld [vmem:[%s882_s3 + $0x18] sm:$0xff]   ;;  %v639_v17 = vld [vmem:[%s882_s3 + $0x50] sm:$0xff]   ;;  %v641_v19 = vld [vmem:[%s882_s3 + $0x48] sm:$0xff]   ;;  %v53_v31 = vsub.s32 0, %v52_v30  ;;  %v57_v33 = vsub.s32 1, %v52_v30 }
  0x12   :  { %v640_v18 = vld [vmem:[%s882_s3 + $0x10] sm:$0xff]   ;;  %v642_v20 = vld [vmem:[%s882_s3 + $0x8] sm:$0xff]   ;;  %v643_v21 = vld [vmem:[%s882_s3 + $0x40] sm:$0xff]   ;;  %588 = vmatprep.subr.bf16.mxu0 %v705_v24 }
  0x13   :  { %555 = vmatpush3.bf16.msra.mxu1 %v632_v10  ;;  %v644_v22 = vld [vmem:[%s882_s3] sm:$0xff]   ;;  %v645_v23 = vld [vmem:[%s884_s5 + $0x38] sm:$0xff]   ;;  %v646_v25 = vld [vmem:[%s884_s5 + $0x30] sm:$0xff]  }
  0x14   :  { %519 = vmatmul.mubr.msk.bf16.vlgmr.msra.gmra.mxu0 %vm66_vm1, %v47_v8  ;;  %556 = vmatprep.subr.bf16.mxu1 %v633_v11  ;;  %v647_v26 = vld [vmem:[%s884_s5 + $0x28] sm:$0xff]   ;;  %v648_v27 = vld [vmem:[%s884_s5 + $0x20] sm:$0xff]   ;;  %v649_v28 = vld [vmem:[%s884_s5 + $0x18] sm:$0xff]  }
  0x15   :  { %589 = vmatpush3.bf16.msra.mxu0 %v645_v23  ;;  %v49_v32 = vld [vmem:[%s881_s2] sm:$0x3]  ;;  %v650_v46 = vld [vmem:[%s884_s5 + $0x10] sm:$0xff]   ;;  %v651_v47 = vld [vmem:[%s884_s5 + $0x8] sm:$0xff]   ;;  %604 = vmatprep.mubr.msk.bf16.mxu0 %vm706_vm2, %v705_v24 }
  0x16   :  { %590 = vmatprep.subr.bf16.mxu0 %v705_v24  ;;  %v54_v34 = vrot.slane %v49_v32, %v53_v31  ;;  %v58_v35 = vrot.slane %v49_v32, %v57_v33  ;;  %v652_v48 = vld [vmem:[%s884_s5] sm:$0xff]   ;;  %v653_v49 = vld [vmem:[%s886_s7 + $0x18] sm:$0xff]   ;;  %v654_v50 = vld [vmem:[%s886_s7 + $0x10] sm:$0xff]  }
  0x17   :  { %557 = vmatpush3.bf16.msra.mxu1 %v634_v12  ;;  %v520_v52 = vld [vmem:[%s883_s4] ss:$0 sm:$0xff]  ;;  %v655_v60 = vld [vmem:[%s886_s7 + $0x8] sm:$0xff]  }
  0x18   :  { %558 = vmatprep.subr.bf16.mxu1 %v635_v13  ;;  %v656_v61 = vld [vmem:[%s886_s7] sm:$0xff]  }
  0x19   :  { %591 = vmatpush3.bf16.msra.mxu0 %v646_v25  ;;  %v537_v62 = vld [vmem:[%s885_s6] ss:$0 sm:$0xff] }
  0x1a   :  { %592 = vmatprep.subr.bf16.mxu0 %v705_v24  ;;  %v546_v6 = vld [vmem:[%s887_s8] ss:$0 sm:$0xff] }
  0x1b   :  { %559 = vmatpush3.bf16.msra.mxu1 %v636_v14 }
  0x1c   :  { %560 = vmatprep.subr.bf16.mxu1 %v637_v15 }
  0x1d   :  { %593 = vmatpush3.bf16.msra.mxu0 %v647_v26 }
  0x1e   :  { %594 = vmatprep.subr.bf16.mxu0 %v705_v24 }
  0x1f   :  { %561 = vmatpush3.bf16.msra.mxu1 %v638_v16 }
  0x20   :  { %562 = vmatprep.subr.bf16.mxu1 %v639_v17 }
  0x21   :  { %595 = vmatpush3.bf16.msra.mxu0 %v648_v27 }
  0x22   :  { %596 = vmatprep.subr.bf16.mxu0 %v705_v24 }
  0x23   :  { %563 = vmatpush3.bf16.msra.mxu1 %v640_v18 }
  0x24   :  { %564 = vmatprep.subr.bf16.mxu1 %v641_v19 }
  0x25   :  { %597 = vmatpush3.bf16.msra.mxu0 %v649_v28 }
  0x26   :  { %598 = vmatprep.subr.bf16.mxu0 %v705_v24 }
  0x27   :  { %565 = vmatpush3.bf16.msra.mxu1 %v642_v20 }
  0x28   :  { %566 = vmatprep.subr.bf16.mxu1 %v643_v21 }
  0x29   :  { %599 = vmatpush3.bf16.msra.mxu0 %v650_v46 }
  0x2a   :  { %600 = vmatprep.subr.bf16.mxu0 %v705_v24 }
  0x2b   :  { %567 = vmatpush3.bf16.msra.mxu1 %v644_v22 }
  0x2c   :  { %608 = vmatprep.subr.bf16.mxu1 %v705_v24 }
  0x2d   :  { %601 = vmatpush3.bf16.msra.mxu0 %v651_v47 }
  0x2e   :  { %602 = vmatprep.subr.bf16.mxu0 %v705_v24 }
  0x31   :  { %603 = vmatpush3.bf16.msra.mxu0 %v652_v48 }
  0xd4   :  { %v111_v36 = vpop.f32.mrf.mxu0 }
  0xd5   :  { %v112_v37 = vadd.f32 %v111_v36, %v54_v34 }
  0xd6   :  { %v113_v38 = vpop.f32.mrf.mxu0 }
  0xd7   :  { %v114_v39 = vadd.f32 %v113_v38, %v58_v35  ;;  %v118_v40 = vmax.f32 %v112_v37, 0.0 }
  0xd8   :  { %v115_v41 = vpop.f32.mrf.mxu0 }
  0xd9   :  { %v119_v42 = vmax.f32 %v114_v39, 0.0  ;;  %v120_v45 = vpack.c.bf16 %v118_v40, %v118_v40 }
  0xda   :  { %v116_v43 = vpop.f32.mrf.mxu0 }
  0xdb   :  { %v121_v44 = vpack.c.bf16 %v119_v42, %v119_v42 }
  0xdd   :  { %289 = vmatprep.mubr.bf16.mxu1 %v121_v44 }
  0xde   :  { %290 = vmatmul.mubr.bf16.vlgmr.msra.gmra.mxu1 %v120_v45 }
  0xdf   :  { %616 = vmatprep.mubr.msk.bf16.mxu1 %vm706_vm2, %v705_v24  ;;  %609 = vmatpush3.bf16.msra.mxu1 %v653_v49 }
  0xe0   :  { %610 = vmatprep.subr.bf16.mxu1 %v705_v24 }
  0xe3   :  { %611 = vmatpush3.bf16.msra.mxu1 %v654_v50 }
  0xe4   :  { %612 = vmatprep.subr.bf16.mxu1 %v705_v24 }
  0xe7   :  { %613 = vmatpush3.bf16.msra.mxu1 %v655_v60 }
  0xe8   :  { %614 = vmatprep.subr.bf16.mxu1 %v705_v24 }
  0xeb   :  { %615 = vmatpush3.bf16.msra.mxu1 %v656_v61 }
 0x19e   :  { %v568_v51 = vpop.f32.mrf.mxu1 }
 0x1a0   :  { %v569_v53 = vpop.f32.mrf.mxu1 }
 0x1a1   :  { %v570_v54 = vadd.f32 %v569_v53, %v568_v51 }
 0x1a2   :  { %v571_v55 = vpop.f32.mrf.mxu1 }
 0x1a3   :  { %v292_v56 = vadd.f32 %v570_v54, %v520_v52 }
 0x1a4   :  { %v572_v57 = vpop.f32.mrf.mxu1 }
 0x1a5   :  { %v297_v58 = vmax.f32 %v292_v56, 0.0 }
 0x1a7   :  { %v298_v59 = vpack.c.bf16 %v297_v58, %v297_v58 }
 0x1a9   :  { %605 = vmatmul.mubr.bf16.vlgmr.msra.gmra.mxu0 %v298_v59 }
 0x269   :  { %v404_v63 = vpop.f32.mrf.mxu0 }
 0x26a   :  { %v405_v0 = vadd.f32 %v537_v62, %v404_v63 }
 0x26b   :  { %v606_v1 = vpop.f32.mrf.mxu0 }
 0x26c   :  { %v410_v2 = vmax.f32 %v405_v0, 0.0 }
 0x26d   :  { %v407_v3 = vpop.f32.mrf.mxu0 }
 0x26e   :  { %v411_v4 = vpack.c.bf16 %v410_v2, %v410_v2 }
 0x26f   :  { %v607_v5 = vpop.f32.mrf.mxu0 }
 0x270   :  { %617 = vmatmul.mubr.msk.bf16.vlgmr.msra.gmra.mxu1 %vm451_vm3, %v411_v4 }
 0x330   :  { %v489_v7 = vpop.f32.mrf.mxu1 }
 0x331   :  { %v490_v8 = vadd.f32 %v546_v6, %v489_v7 }
 0x332   :  { %v618_v9 = vpop.f32.mrf.mxu1 }
 0x333   :  { %657 = vtanh.f32 %v490_v8 }
 0x334   :  { %v492_v10 = vpop.f32.mrf.mxu1 }
 0x336   :  { %v619_v11 = vpop.f32.mrf.mxu1 }
 0x340   :  { %v658_v12 = vpop.eup %657 }
 0x341   :  { %v496_v13 = vmul.f32 2.0, %v658_v12 }
 0x343   :  { %498 = vst.msk [vmem:[#allocation5] sm:$0xff] %vm497_vm4, %v496_v13 }
 0x344   :  { %503 = vsyncadd [#allocation4], 64  ;;  %s707_s6 = smov [#allocation5]  }
 0x345   :  { %s504_s7 = sshll.u32 %s707_s6, 4  ;;  %s505_s7 = int_to_ptr.vmem [resolvable:$true] %s504_s7 }
 0x346   :  { %s679_s27 = scalar_lea.vmem %s505_s7, 64  ;;  %s683_s28 = scalar_lea.vmem %s505_s7, 128 }
 0x347   :  { %p680_p5 = scmp.ne.s32.totalorder %s505_s7, %s679_s27  ;;  %p684_p6 = scmp.lt.s32.totalorder %s505_s7, %s505_s7 }
 0x348   :  { %p685_p7 = scmp.lt.s32.totalorder %s683_s28, %s679_s27 }
 0x34a   :  { %p686_p8 = por %p685_p7, %p684_p6 }
 0x34c   :  { %p687_p9 = pnand %p686_p8, %p680_p5 }
 0x34e   :  { %690 = shalt.err (!%p687_p9)
}
 0x34f   :  { %s708_s8 = smov 64   ;;  %s709_s29 = smov 4  }
 0x350   :  { %510 = dma.vmem_to_hbm [thread:$0]  %s505_s7, 64, %s888_s9, [#allocation4], %s708_s8, %s708_s8, %s709_s29  }
 0x351   :  { %701 = dma.done.wait [#allocation4], 128  }
 0x352   :  { %702 = vsyncadd [#allocation4], 4294967168 }
 0x353   :  { %514 = vsyncpa [#allocation3], 1 }
 0x354   :  { %515 = vsyncpa [#allocation4], 1 }

</bundles_post_ra>
